<compile_context>
chip_gen: v7x
topology: tpu7x:2x2x1
jax: 0.10.0
libtpu: 0.0.40
codegen_flags: <defaults>
</compile_context>

<pallas_src>
import functools

import jax
import jax.numpy as jnp
from jax.experimental import pallas as pl
from jax.experimental.pallas import tpu as pltpu


_GELU_C = 0.7978845608028654  # sqrt(2/pi)


def _gelu_tanh(x):
    # matches nn.GELU(approximate='tanh')
    return 0.5 * x * (1.0 + jnp.tanh(_GELU_C * (x + 0.044715 * x * x * x)))


def _round_up(n, m):
    return ((n + m - 1) // m) * m


# ----------------------------------------------------------------------------
# Fused MLP kernel: (x @ W0 + b0 -> GELU) -> [middle layers] -> final Linear
# ----------------------------------------------------------------------------
def _fused_mlp_kernel(x_ref, w0_ref, b0_ref, wmid_ref, bmid_ref,
                      wlast_ref, blast_ref, o_ref, *, n_mid: int):
    # x_ref:    (tm, Hp)        bf16
    # w0_ref:   (Hp, Dmp)       bf16   b0_ref:    (1, Dmp)      f32
    # wmid_ref: (n_mid, Dmp, Dmp) bf16 bmid_ref:  (n_mid, 1, Dmp) f32
    # wlast_ref:(Dmp, Np)       bf16   blast_ref: (1, Np)       f32
    # o_ref:    (tm, Np)        f32
    h = jnp.dot(x_ref[...], w0_ref[...], preferred_element_type=jnp.float32)
    h = _gelu_tanh(h + b0_ref[...])
    for l in range(n_mid):  # static unroll: n_mid is a trace-time constant
        h = jnp.dot(h.astype(jnp.bfloat16), wmid_ref[l],
                    preferred_element_type=jnp.float32)
        h = _gelu_tanh(h + bmid_ref[l])
    out = jnp.dot(h.astype(jnp.bfloat16), wlast_ref[...],
                  preferred_element_type=jnp.float32)
    o_ref[...] = (out + blast_ref[...]).astype(o_ref.dtype)


def srebm_forward(x, kp):
    """forward(x) = ebm(x) -> (batch, classes + 1), single fused Pallas call."""
    M, H = x.shape
    Hp, Dmp = kp["w0"].shape
    Np = kp["wlast"].shape[1]
    n_mid = kp["wmid"].shape[0]
    assert H <= Hp

    # Batch tiling: pad M to a multiple of 16 (bf16 sublane pack); cap tm=256.
    if M <= 256:
        tm = max(16, _round_up(M, 16))
        Mp = tm
    else:
        tm = 256
        Mp = _round_up(M, tm)

    x_pad = (jnp.zeros((Mp, Hp), jnp.float32).at[:M, :H].set(x)
             .astype(jnp.bfloat16))

    # Conservative scoped-VMEM estimate (resident weights + double-buffered
    # x/out tiles), clamped to [16 MiB, 64 MiB] so it is valid on v5e..v7x.
    def _nbytes(a):
        return a.size * a.dtype.itemsize
    est = (_nbytes(x_pad) + _nbytes(kp["w0"]) + _nbytes(kp["b0"])
           + _nbytes(kp["wmid"]) + _nbytes(kp["bmid"])
           + _nbytes(kp["wlast"]) + _nbytes(kp["blast"]) + Mp * Np * 4)
    vmem_limit = int(min(64 << 20, max(16 << 20, 2 * est + (2 << 20))))

    kernel = functools.partial(_fused_mlp_kernel, n_mid=n_mid)
    out = pl.pallas_call(
        kernel,
        out_shape=jax.ShapeDtypeStruct((Mp, Np), jnp.float32),
        grid_spec=pltpu.PrefetchScalarGridSpec(
            num_scalar_prefetch=0,
            grid=(Mp // tm,),
            in_specs=[
                pl.BlockSpec((tm, Hp), lambda i: (i, 0)),            # x tile
                pl.BlockSpec((Hp, Dmp), lambda i: (0, 0)),           # W0 (resident)
                pl.BlockSpec((1, Dmp), lambda i: (0, 0)),            # b0
                pl.BlockSpec((n_mid, Dmp, Dmp), lambda i: (0, 0, 0)),  # W_mid stack
                pl.BlockSpec((n_mid, 1, Dmp), lambda i: (0, 0, 0)),    # b_mid stack
                pl.BlockSpec((Dmp, Np), lambda i: (0, 0)),           # W_last
                pl.BlockSpec((1, Np), lambda i: (0, 0)),             # b_last
            ],
            out_specs=pl.BlockSpec((tm, Np), lambda i: (i, 0)),
        ),
        compiler_params=pltpu.CompilerParams(
            dimension_semantics=("arbitrary",),  # keeps weights VMEM-resident
            vmem_limit_bytes=vmem_limit,
        ),
    )(x_pad, kp["w0"], kp["b0"], kp["wmid"], kp["bmid"],
      kp["wlast"], kp["blast"])

    return out[:M, : kp["n_out"]]


# ----------------------------------------------------------------------------
# Parameter setup (plain-JAX glue)
# ----------------------------------------------------------------------------
def spectral_normalize(w_oi, key, n_iter=3):
    """Power-iteration spectral norm of a PyTorch-layout weight (out, in)."""
    out_f, in_f = w_oi.shape
    u = jax.random.normal(key, (out_f,), dtype=jnp.float32)
    u = u / (jnp.linalg.norm(u) + 1e-12)
    v = None
    for _ in range(n_iter):
        v = w_oi.T @ u
        v = v / (jnp.linalg.norm(v) + 1e-12)
        u = w_oi @ v
        u = u / (jnp.linalg.norm(u) + 1e-12)
    sigma = u @ (w_oi @ v)
    return w_oi / sigma


def init_srebm_params(key, hidden_size, middle_size, n_layers, classes):
    """Deterministic synthetic parameters mirroring the PyTorch module:
    Linear(hidden, middle), (n_layers-1) x Linear(middle, middle),
    Linear(middle, classes+1), all spectral-normalized.
    Returns list of (W_(in,out) f32, b_(out,) f32)."""
    assert n_layers >= 2, "need at least one middle layer"
    dims = [(hidden_size, middle_size)]
    dims += [(middle_size, middle_size)] * (n_layers - 1)
    dims += [(middle_size, classes + 1)]

    params = []
    for li, (in_f, out_f) in enumerate(dims):
        kw, kb, ku = jax.random.split(jax.random.fold_in(key, li), 3)
        bound = 1.0 / jnp.sqrt(in_f)
        w_oi = jax.random.uniform(kw, (out_f, in_f), jnp.float32, -bound, bound)
        b = jax.random.uniform(kb, (out_f,), jnp.float32, -bound, bound)
        w_oi = spectral_normalize(w_oi, ku)
        params.append((w_oi.T, b))  # store as (in, out) for x @ W
    return params


def prepare_kernel_params(params):
    """Pad feature dims to multiples of 128, cast weights to bf16 (after the
    spectral-norm division so the Lipschitz scale is kept), pack the middle
    layers into one stacked array."""
    assert len(params) >= 3
    w0, b0 = params[0]
    wl, bl = params[-1]
    mids = params[1:-1]

    H, Dm = w0.shape
    C1 = wl.shape[1]
    Hp, Dmp, Np = _round_up(H, 128), _round_up(Dm, 128), _round_up(C1, 128)

    def pad_w(w, r, c):
        return jnp.zeros((r, c), jnp.float32).at[: w.shape[0], : w.shape[1]].set(w)

    def pad_b(b, c):
        return jnp.zeros((1, c), jnp.float32).at[0, : b.shape[0]].set(b)

    return dict(
        w0=pad_w(w0, Hp, Dmp).astype(jnp.bfloat16),
        b0=pad_b(b0, Dmp),
        wmid=jnp.stack([pad_w(w, Dmp, Dmp) for (w, _) in mids]).astype(jnp.bfloat16),
        bmid=jnp.stack([pad_b(b, Dmp) for (_, b) in mids]),
        wlast=pad_w(wl, Dmp, Np).astype(jnp.bfloat16),
        blast=pad_b(bl, Np),
        n_out=C1,
    )


# ----------------------------------------------------------------------------
# Reference (pure jnp), mirroring the kernel's bf16-operand / f32-acc numerics
# ----------------------------------------------------------------------------
def srebm_forward_ref(x, params):
    def q(a):
        return a.astype(jnp.bfloat16).astype(jnp.float32)

    h = q(x)
    n = len(params)
    for li, (w, b) in enumerate(params):
        h = jnp.dot(h, q(w), preferred_element_type=jnp.float32) + b
        if li != n - 1:
            h = q(_gelu_tanh(h))
    return h


if __name__ == "__main__":
    # Small shapes consistent with the module (scaled down from 784/2048/8).
    batch = 8
    hidden_size = 128
    middle_size = 256
    n_layers = 3
    classes = 10

    key = jax.random.PRNGKey(0)
    k_x, k_p = jax.random.split(key)
    x = jax.random.normal(k_x, (batch, hidden_size), dtype=jnp.float32)
    params = init_srebm_params(k_p, hidden_size, middle_size, n_layers, classes)
    kp = prepare_kernel_params(params)

    out = srebm_forward(x, kp)
    out = jax.block_until_ready(out)

    ref = srebm_forward_ref(x, params)
    assert out.shape == (batch, classes + 1)
    assert jnp.allclose(out, ref, atol=2e-3, rtol=2e-3), float(
        jnp.max(jnp.abs(out - ref))
    )

    # TODO(synk): infer_x / train_step / sample need autograd + AdamW on the
    # input (training-time inference loop), which is out of scope for a
    # forward-pass kernel; weights could be kept VMEM-resident across the
    # Langevin/AdamW iterations via cross-call futures (P10).
    print("KERNEL_OK")
</pallas_src>

<mosaic_0001>
module attributes {stable_mosaic.version = 11 : i64} {
  func.func @_fused_mlp_kernel(%arg0: i32, %arg1: memref<16x128xbf16, #tpu.memory_space<vmem>>, %arg2: memref<128x256xbf16, #tpu.memory_space<vmem>>, %arg3: memref<1x256xf32, #tpu.memory_space<vmem>>, %arg4: memref<2x256x256xbf16, #tpu.memory_space<vmem>>, %arg5: memref<2x1x256xf32, #tpu.memory_space<vmem>>, %arg6: memref<256x128xbf16, #tpu.memory_space<vmem>>, %arg7: memref<1x128xf32, #tpu.memory_space<vmem>>, %arg8: memref<16x128xf32, #tpu.memory_space<vmem>>) attributes {dimension_semantics = [#tpu.dimension_semantics<arbitrary>], iteration_bounds = array<i64: 1>, scalar_prefetch = 0 : i64, scratch_operands = 0 : i64, tpu.core_type = #tpu.core_type<tc>, window_params = [{transform_indices = @transform_0, window_bounds = array<i64: 16, 128>}, {pipeline_mode = #tpu.pipeline_mode<synchronous>, transform_indices = @transform_1, window_bounds = array<i64: 128, 256>}, {pipeline_mode = #tpu.pipeline_mode<synchronous>, transform_indices = @transform_2, window_bounds = array<i64: 1, 256>}, {pipeline_mode = #tpu.pipeline_mode<synchronous>, transform_indices = @transform_3, window_bounds = array<i64: 2, 256, 256>}, {pipeline_mode = #tpu.pipeline_mode<synchronous>, transform_indices = @transform_4, window_bounds = array<i64: 2, 1, 256>}, {pipeline_mode = #tpu.pipeline_mode<synchronous>, transform_indices = @transform_5, window_bounds = array<i64: 256, 128>}, {pipeline_mode = #tpu.pipeline_mode<synchronous>, transform_indices = @transform_6, window_bounds = array<i64: 1, 128>}, {transform_indices = @transform_7, window_bounds = array<i64: 16, 128>}]} {
    %c0 = arith.constant 0 : index
    %c0_0 = arith.constant 0 : index
    %0 = vector.load %arg1[%c0, %c0_0] : memref<16x128xbf16, #tpu.memory_space<vmem>>, vector<16x128xbf16>
    %c0_1 = arith.constant 0 : index
    %c0_2 = arith.constant 0 : index
    %1 = vector.load %arg2[%c0_1, %c0_2] : memref<128x256xbf16, #tpu.memory_space<vmem>>, vector<128x256xbf16>
    %cst = arith.constant dense<0.000000e+00> : vector<16x256xf32>
    %2 = tpu.matmul %0, %1, %cst {dimension_numbers = #tpu.dot_dimension_numbers<[1], [0], [0], [1], [0, 0, 1, 1], [], []>} : vector<16x128xbf16>, vector<128x256xbf16>, vector<16x256xf32> -> vector<16x256xf32>
    %c0_3 = arith.constant 0 : index
    %c0_4 = arith.constant 0 : index
    %3 = vector.load %arg3[%c0_3, %c0_4] : memref<1x256xf32, #tpu.memory_space<vmem>>, vector<1x256xf32>
    %4 = vector.broadcast %3 : vector<1x256xf32> to vector<16x256xf32>
    %5 = arith.addf %2, %4 : vector<16x256xf32>
    %cst_5 = arith.constant 5.000000e-01 : f32
    %6 = vector.broadcast %cst_5 : f32 to vector<16x256xf32>
    %7 = arith.mulf %6, %5 : vector<16x256xf32>
    %cst_6 = arith.constant 4.471500e-02 : f32
    %8 = vector.broadcast %cst_6 : f32 to vector<16x256xf32>
    %9 = arith.mulf %8, %5 : vector<16x256xf32>
    %10 = arith.mulf %9, %5 : vector<16x256xf32>
    %11 = arith.mulf %10, %5 : vector<16x256xf32>
    %12 = arith.addf %5, %11 : vector<16x256xf32>
    %cst_7 = arith.constant 0.797884583 : f32
    %13 = vector.broadcast %cst_7 : f32 to vector<16x256xf32>
    %14 = arith.mulf %13, %12 : vector<16x256xf32>
    %15 = math.tanh %14 : vector<16x256xf32>
    %cst_8 = arith.constant 1.000000e+00 : f32
    %16 = vector.broadcast %cst_8 : f32 to vector<16x256xf32>
    %17 = arith.addf %16, %15 : vector<16x256xf32>
    %18 = arith.mulf %7, %17 : vector<16x256xf32>
    %19 = arith.truncf %18 : vector<16x256xf32> to vector<16x256xbf16>
    %c0_9 = arith.constant 0 : index
    %c0_10 = arith.constant 0 : index
    %c0_11 = arith.constant 0 : index
    %20 = vector.load %arg4[%c0_9, %c0_10, %c0_11] : memref<2x256x256xbf16, #tpu.memory_space<vmem>>, vector<1x256x256xbf16>
    %21 = vector.shape_cast %20 : vector<1x256x256xbf16> to vector<256x256xbf16>
    %cst_12 = arith.constant dense<0.000000e+00> : vector<16x256xf32>
    %22 = tpu.matmul %19, %21, %cst_12 {dimension_numbers = #tpu.dot_dimension_numbers<[1], [0], [0], [1], [0, 0, 1, 1], [], []>} : vector<16x256xbf16>, vector<256x256xbf16>, vector<16x256xf32> -> vector<16x256xf32>
    %c0_13 = arith.constant 0 : index
    %c0_14 = arith.constant 0 : index
    %c0_15 = arith.constant 0 : index
    %23 = vector.load %arg5[%c0_13, %c0_14, %c0_15] : memref<2x1x256xf32, #tpu.memory_space<vmem>>, vector<1x1x256xf32>
    %24 = vector.shape_cast %23 : vector<1x1x256xf32> to vector<1x256xf32>
    %25 = vector.broadcast %24 : vector<1x256xf32> to vector<16x256xf32>
    %26 = arith.addf %22, %25 : vector<16x256xf32>
    %cst_16 = arith.constant 5.000000e-01 : f32
    %27 = vector.broadcast %cst_16 : f32 to vector<16x256xf32>
    %28 = arith.mulf %27, %26 : vector<16x256xf32>
    %cst_17 = arith.constant 4.471500e-02 : f32
    %29 = vector.broadcast %cst_17 : f32 to vector<16x256xf32>
    %30 = arith.mulf %29, %26 : vector<16x256xf32>
    %31 = arith.mulf %30, %26 : vector<16x256xf32>
    %32 = arith.mulf %31, %26 : vector<16x256xf32>
    %33 = arith.addf %26, %32 : vector<16x256xf32>
    %cst_18 = arith.constant 0.797884583 : f32
    %34 = vector.broadcast %cst_18 : f32 to vector<16x256xf32>
    %35 = arith.mulf %34, %33 : vector<16x256xf32>
    %36 = math.tanh %35 : vector<16x256xf32>
    %cst_19 = arith.constant 1.000000e+00 : f32
    %37 = vector.broadcast %cst_19 : f32 to vector<16x256xf32>
    %38 = arith.addf %37, %36 : vector<16x256xf32>
    %39 = arith.mulf %28, %38 : vector<16x256xf32>
    %40 = arith.truncf %39 : vector<16x256xf32> to vector<16x256xbf16>
    %c1 = arith.constant 1 : index
    %c0_20 = arith.constant 0 : index
    %c0_21 = arith.constant 0 : index
    %41 = vector.load %arg4[%c1, %c0_20, %c0_21] : memref<2x256x256xbf16, #tpu.memory_space<vmem>>, vector<1x256x256xbf16>
    %42 = vector.shape_cast %41 : vector<1x256x256xbf16> to vector<256x256xbf16>
    %cst_22 = arith.constant dense<0.000000e+00> : vector<16x256xf32>
    %43 = tpu.matmul %40, %42, %cst_22 {dimension_numbers = #tpu.dot_dimension_numbers<[1], [0], [0], [1], [0, 0, 1, 1], [], []>} : vector<16x256xbf16>, vector<256x256xbf16>, vector<16x256xf32> -> vector<16x256xf32>
    %c1_23 = arith.constant 1 : index
    %c0_24 = arith.constant 0 : index
    %c0_25 = arith.constant 0 : index
    %44 = vector.load %arg5[%c1_23, %c0_24, %c0_25] : memref<2x1x256xf32, #tpu.memory_space<vmem>>, vector<1x1x256xf32>
    %45 = vector.shape_cast %44 : vector<1x1x256xf32> to vector<1x256xf32>
    %46 = vector.broadcast %45 : vector<1x256xf32> to vector<16x256xf32>
    %47 = arith.addf %43, %46 : vector<16x256xf32>
    %cst_26 = arith.constant 5.000000e-01 : f32
    %48 = vector.broadcast %cst_26 : f32 to vector<16x256xf32>
    %49 = arith.mulf %48, %47 : vector<16x256xf32>
    %cst_27 = arith.constant 4.471500e-02 : f32
    %50 = vector.broadcast %cst_27 : f32 to vector<16x256xf32>
    %51 = arith.mulf %50, %47 : vector<16x256xf32>
    %52 = arith.mulf %51, %47 : vector<16x256xf32>
    %53 = arith.mulf %52, %47 : vector<16x256xf32>
    %54 = arith.addf %47, %53 : vector<16x256xf32>
    %cst_28 = arith.constant 0.797884583 : f32
    %55 = vector.broadcast %cst_28 : f32 to vector<16x256xf32>
    %56 = arith.mulf %55, %54 : vector<16x256xf32>
    %57 = math.tanh %56 : vector<16x256xf32>
    %cst_29 = arith.constant 1.000000e+00 : f32
    %58 = vector.broadcast %cst_29 : f32 to vector<16x256xf32>
    %59 = arith.addf %58, %57 : vector<16x256xf32>
    %60 = arith.mulf %49, %59 : vector<16x256xf32>
    %61 = arith.truncf %60 : vector<16x256xf32> to vector<16x256xbf16>
    %c0_30 = arith.constant 0 : index
    %c0_31 = arith.constant 0 : index
    %62 = vector.load %arg6[%c0_30, %c0_31] : memref<256x128xbf16, #tpu.memory_space<vmem>>, vector<256x128xbf16>
    %cst_32 = arith.constant dense<0.000000e+00> : vector<16x128xf32>
    %63 = tpu.matmul %61, %62, %cst_32 {dimension_numbers = #tpu.dot_dimension_numbers<[1], [0], [0], [1], [0, 0, 1, 1], [], []>} : vector<16x256xbf16>, vector<256x128xbf16>, vector<16x128xf32> -> vector<16x128xf32>
    %c0_33 = arith.constant 0 : index
    %c0_34 = arith.constant 0 : index
    %64 = vector.load %arg7[%c0_33, %c0_34] : memref<1x128xf32, #tpu.memory_space<vmem>>, vector<1x128xf32>
    %65 = vector.broadcast %64 : vector<1x128xf32> to vector<16x128xf32>
    %66 = arith.addf %63, %65 : vector<16x128xf32>
    %c0_35 = arith.constant 0 : index
    %c0_36 = arith.constant 0 : index
    %67 = vector.load %arg8[%c0_35, %c0_36] : memref<16x128xf32, #tpu.memory_space<vmem>>, vector<16x128xf32>
    tpu.vector_store %arg8[%c0_35, %c0_36], %66 {strides = array<i32>} : memref<16x128xf32, #tpu.memory_space<vmem>>, vector<16x128xf32>,
    return
  }
  func.func @transform_0(%arg0: i32) -> (i32, i32) {
    %c0_i32 = arith.constant 0 : i32
    %c0_i32_0 = arith.constant 0 : i32
    return %arg0, %c0_i32 : i32, i32
  }
  func.func @transform_1(%arg0: i32) -> (i32, i32) {
    %c0_i32 = arith.constant 0 : i32
    %c0_i32_0 = arith.constant 0 : i32
    %c0_i32_1 = arith.constant 0 : i32
    return %c0_i32, %c0_i32_0 : i32, i32
  }
  func.func @transform_2(%arg0: i32) -> (i32, i32) {
    %c0_i32 = arith.constant 0 : i32
    %c0_i32_0 = arith.constant 0 : i32
    %c0_i32_1 = arith.constant 0 : i32
    return %c0_i32, %c0_i32_0 : i32, i32
  }
  func.func @transform_3(%arg0: i32) -> (i32, i32, i32) {
    %c0_i32 = arith.constant 0 : i32
    %c0_i32_0 = arith.constant 0 : i32
    %c0_i32_1 = arith.constant 0 : i32
    %c0_i32_2 = arith.constant 0 : i32
    return %c0_i32, %c0_i32_0, %c0_i32_1 : i32, i32, i32
  }
  func.func @transform_4(%arg0: i32) -> (i32, i32, i32) {
    %c0_i32 = arith.constant 0 : i32
    %c0_i32_0 = arith.constant 0 : i32
    %c0_i32_1 = arith.constant 0 : i32
    %c0_i32_2 = arith.constant 0 : i32
    return %c0_i32, %c0_i32_0, %c0_i32_1 : i32, i32, i32
  }
  func.func @transform_5(%arg0: i32) -> (i32, i32) {
    %c0_i32 = arith.constant 0 : i32
    %c0_i32_0 = arith.constant 0 : i32
    %c0_i32_1 = arith.constant 0 : i32
    return %c0_i32, %c0_i32_0 : i32, i32
  }
  func.func @transform_6(%arg0: i32) -> (i32, i32) {
    %c0_i32 = arith.constant 0 : i32
    %c0_i32_0 = arith.constant 0 : i32
    %c0_i32_1 = arith.constant 0 : i32
    return %c0_i32, %c0_i32_0 : i32, i32
  }
  func.func @transform_7(%arg0: i32) -> (i32, i32) {
    %c0_i32 = arith.constant 0 : i32
    %c0_i32_0 = arith.constant 0 : i32
    return %arg0, %c0_i32 : i32, i32
  }
}

</mosaic_0001>

<bundles_post_ra>
// kernel: tpu_custom_call.1
= control target key start
LH: loop header
LB: loop body
LE: loop exit
PB: predicated region body
PF: predicated region fallthrough
CT: control target
= control target key end

     0   :  { %12 = vsyncpa [#allocation3], 0  ;;  %s1613_s0 = inlined_call_operand.hbm [shape: bf16[16,128], index: 0, kind: input, shape index: {}]   ;;  %s1614_s1 = inlined_call_operand.hbm [shape: bf16[128,256], index: 1, kind: input, shape index: {}]   ;;  %s1615_s2 = inlined_call_operand.vmem [shape: f32[1,256], index: 2, kind: input, shape index: {}]   ;;  %s1616_s3 = inlined_call_operand.hbm [shape: bf16[2,256,256], index: 3, kind: input, shape index: {}]   ;;  %s1617_s4 = inlined_call_operand.vmem [shape: f32[2,1,256], index: 4, kind: input, shape index: {}]   ;;  %s1618_s5 = inlined_call_operand.hbm [shape: bf16[256,128], index: 5, kind: input, shape index: {}]   ;;  %s1619_s6 = inlined_call_operand.vmem [shape: f32[1,128], index: 6, kind: input, shape index: {}]   ;;  %s1620_s7 = inlined_call_operand.hbm [shape: f32[16,128], index: 7, kind: output, shape index: {}]  }
   0x1   :  { %13 = vsyncpa [#allocation6], 0 }
   0x2   :  { %14 = vsyncpa [#allocation9], 0 }
   0x3   :  { %15 = vsyncpa [#allocation4], 0  ;;  %s1459_s24 = smov [#allocation5]   ;;  %s1341_s28 = scalar_lea.hbm %s1614_s1, 2048 }
   0x4   :  { %s33_s25 = sshll.u32 %s1459_s24, 4  ;;  %p1342_p0 = scmp.ne.s32.totalorder %s1614_s1, %s1341_s28  ;;  %s34_s25 = int_to_ptr.vmem [resolvable:$true] %s33_s25 }
   0x5   :  { %p1345_p1 = scmp.lt.u32.totalorder %s1341_s28, %s1614_s1 }
   0x7   :  { %p1347_p2 = pnand %p1345_p1, %p1342_p0 }
   0x9   :  { %1350 = shalt.err (!%p1347_p2)
}
   0xa   :  { %s1351_s10 = scalar_lea.vmem %s34_s25, 2048  ;;  %p1356_p4 = scmp.lt.s32.totalorder %s34_s25, %s34_s25 }
   0xb   :  { %p1352_p3 = scmp.ne.s32.totalorder %s34_s25, %s1351_s10  ;;  %p1357_p5 = scmp.lt.s32.totalorder %s1351_s10, %s1351_s10 }
   0xd   :  { %p1358_p6 = por %p1357_p5, %p1356_p4 }
   0xf   :  { %p1359_p7 = pnand %p1358_p6, %p1352_p3 }
  0x11   :  { %1362 = shalt.err (!%p1359_p7)
}
  0x12   :  { %s1460_s11 = smov 128   ;;  %s1461_s12 = smov 8  }
  0x13   :  { %39 = dma.hbm_to_vmem [thread:$0]  %s1614_s1, 2048, %s34_s25, [#allocation6], %s1460_s11, %s1460_s11, %s1461_s12  }
  0x14   :  { %s1462_s15 = smov [#allocation2]   ;;  %s1363_s19 = scalar_lea.hbm %s1613_s0, 128 }
  0x15   :  { %s21_s16 = sshll.u32 %s1462_s15, 4  ;;  %p1364_p8 = scmp.ne.s32.totalorder %s1613_s0, %s1363_s19  ;;  %s22_s16 = int_to_ptr.vmem [resolvable:$true] %s21_s16 }
  0x16   :  { %p1367_p9 = scmp.lt.u32.totalorder %s1363_s19, %s1613_s0 }
  0x18   :  { %p1369_p10 = pnand %p1367_p9, %p1364_p8 }
  0x1a   :  { %1372 = shalt.err (!%p1369_p10)
}
  0x1b   :  { %s1373_s24 = scalar_lea.vmem %s22_s16, 128  ;;  %p1378_p12 = scmp.lt.s32.totalorder %s22_s16, %s22_s16 }
  0x1c   :  { %p1374_p11 = scmp.ne.s32.totalorder %s22_s16, %s1373_s24  ;;  %p1379_p13 = scmp.lt.s32.totalorder %s1373_s24, %s1373_s24 }
  0x1e   :  { %p1380_p0 = por %p1379_p13, %p1378_p12 }
  0x20   :  { %p1381_p1 = pnand %p1380_p0, %p1374_p11 }
  0x22   :  { %1384 = shalt.err (!%p1381_p1)
}
  0x23   :  { %s1463_s1 = smov 64   ;;  %s1464_s25 = smov 4  }
  0x24   :  { %27 = dma.hbm_to_vmem [thread:$0]  %s1613_s0, 128, %s22_s16, [#allocation3], %s1463_s1, %s1463_s1, %s1464_s25  }
  0x25   :  { %s1465_s28 = smov [#allocation7]   ;;  %s1466_s30 = smov [#allocation8]  }
  0x26   :  { %s47_s29 = sshll.u32 %s1465_s28, 4  ;;  %s61_s8 = sshll.u32 %s1466_s30, 4  ;;  %s48_s29 = int_to_ptr.vmem [resolvable:$true] %s47_s29  ;;  %s1539_s8 = int_to_ptr.vmem [resolvable:$true] %s61_s8 }
  0x27   :  { %s1385_s13 = scalar_lea.hbm %s1616_s3, 8192 }
  0x28   :  { %p1386_p2 = scmp.ne.s32.totalorder %s1616_s3, %s1385_s13  ;;  %p1389_p3 = scmp.lt.u32.totalorder %s1385_s13, %s1616_s3 }
  0x2a   :  { %p1391_p4 = pnand %p1389_p3, %p1386_p2 }
  0x2c   :  { %1394 = shalt.err (!%p1391_p4)
}
  0x2d   :  { %s1395_s0 = scalar_lea.vmem %s48_s29, 8192  ;;  %p1400_p6 = scmp.lt.s32.totalorder %s48_s29, %s48_s29 }
  0x2e   :  { %p1396_p5 = scmp.ne.s32.totalorder %s48_s29, %s1395_s0  ;;  %p1401_p7 = scmp.lt.s32.totalorder %s1395_s0, %s1395_s0 }
  0x30   :  { %p1402_p8 = por %p1401_p7, %p1400_p6 }
  0x32   :  { %p1403_p9 = pnand %p1402_p8, %p1396_p5 }
  0x34   :  { %1406 = shalt.err (!%p1403_p9)
}
  0x35   :  { %53 = dma.hbm_to_vmem [thread:$0]  %s1616_s3, 8192, %s48_s29, [#allocation6], %s1460_s11, %s1460_s11, %s1461_s12  }
  0x36   :  { %s1407_s22 = scalar_lea.hbm %s1618_s5, 2048 }
  0x37   :  { %p1408_p10 = scmp.ne.s32.totalorder %s1618_s5, %s1407_s22  ;;  %p1411_p11 = scmp.lt.u32.totalorder %s1407_s22, %s1618_s5 }
  0x39   :  { %p1413_p12 = pnand %p1411_p11, %p1408_p10 }
  0x3b   :  { %1416 = shalt.err (!%p1413_p12)
}
  0x3c   :  { %s1417_s28 = scalar_lea.vmem %s1539_s8, 2048  ;;  %p1422_p0 = scmp.lt.s32.totalorder %s1539_s8, %s1539_s8 }
  0x3d   :  { %p1418_p13 = scmp.ne.s32.totalorder %s1539_s8, %s1417_s28  ;;  %p1423_p1 = scmp.lt.s32.totalorder %s1417_s28, %s1417_s28 }
  0x3f   :  { %p1424_p2 = por %p1423_p1, %p1422_p0 }
  0x41   :  { %p1425_p3 = pnand %p1424_p2, %p1418_p13 }
  0x43   :  { %1428 = shalt.err (!%p1425_p3)
}
  0x44   :  { %67 = dma.hbm_to_vmem [thread:$0]  %s1618_s5, 2048, %s1539_s8, [#allocation9], %s1463_s1, %s1463_s1, %s1464_s25  }
  0x45   :  { %1451 = dma.done.wait [#allocation3], 128  }
  0x46   :  { %1452 = vsyncadd [#allocation3], 4294967168 }
  0x47   :  { %1453 = dma.done.wait [#allocation6], 10240  }
  0x48   :  { %1454 = vsyncadd [#allocation6], 4294957056 }
  0x49   :  { %1455 = dma.done.wait [#allocation9], 2048  }
  0x4a   :  { %1456 = vsyncadd [#allocation9], 4294965248  ;;  %v1467_v0 = vmov 0   ;;  %v1180_v1 = vld [vmem:[#allocation5 + $0x4] ss:$8 sps:$4 sm:$0xff]   ;;  %v1204_v28 = vld [vmem:[#allocation2] sm:$0xff]  }
  0x4b   :  { %231 = vmatprep.mubr.bf16.mxu0 %v1467_v0  ;;  %v1182_v2 = vld [vmem:[#allocation5] ss:$8 sps:$4 sm:$0xff]   ;;  %199 = vmatprep.subr.bf16.mxu0 %v1180_v1  ;;  %v1183_v3 = vld [vmem:[#allocation5 + $0x14] ss:$8 sps:$4 sm:$0xff]   ;;  %v1185_v4 = vld [vmem:[#allocation5 + $0x10] ss:$8 sps:$4 sm:$0xff]  }
  0x4c   :  { %200 = vmatpush1.bf16.msra.mxu0 %v1182_v2  ;;  %v1186_v5 = vld [vmem:[#allocation5 + $0x24] ss:$8 sps:$4 sm:$0xff]   ;;  %v1188_v6 = vld [vmem:[#allocation5 + $0x20] ss:$8 sps:$4 sm:$0xff]   ;;  %v1189_v7 = vld [vmem:[#allocation5 + $0x34] ss:$8 sps:$4 sm:$0xff]   ;;  %v103_v2 = vlaneseq }
  0x4d   :  { %201 = vmatprep.subr.bf16.mxu0 %v1183_v3  ;;  %v1191_v8 = vld [vmem:[#allocation5 + $0x30] ss:$8 sps:$4 sm:$0xff]   ;;  %v1192_v9 = vld [vmem:[#allocation5 + $0x44] ss:$8 sps:$4 sm:$0xff]   ;;  %v1207_v11 = vld [vmem:[#allocation7] ss:$8 sps:$4 sm:$0xff]  }
  0x4e   :  { %v1205_v10 = vld [vmem:[#allocation7 + $0x4] ss:$8 sps:$4 sm:$0xff]   ;;  %v1208_v12 = vld [vmem:[#allocation7 + $0x14] ss:$8 sps:$4 sm:$0xff]   ;;  %v1194_v13 = vld [vmem:[#allocation5 + $0x40] ss:$8 sps:$4 sm:$0xff]  }
  0x4f   :  { %484 = vmatprep.subr.bf16.mxu1 %v1205_v10  ;;  %v1210_v14 = vld [vmem:[#allocation7 + $0x10] ss:$8 sps:$4 sm:$0xff]   ;;  %v1195_v15 = vld [vmem:[#allocation5 + $0x54] ss:$8 sps:$4 sm:$0xff]   ;;  %v1211_v16 = vld [vmem:[#allocation7 + $0x24] ss:$8 sps:$4 sm:$0xff]  }
  0x50   :  { %202 = vmatpush1.bf16.msra.mxu0 %v1185_v4  ;;  %485 = vmatpush1.bf16.msra.mxu1 %v1207_v11  ;;  %v1197_v17 = vld [vmem:[#allocation5 + $0x50] ss:$8 sps:$4 sm:$0xff]   ;;  %v1213_v18 = vld [vmem:[#allocation7 + $0x20] ss:$8 sps:$4 sm:$0xff]   ;;  %v1198_v19 = vld [vmem:[#allocation5 + $0x64] ss:$8 sps:$4 sm:$0xff]  }
  0x51   :  { %203 = vmatprep.subr.bf16.mxu0 %v1186_v5  ;;  %486 = vmatprep.subr.bf16.mxu1 %v1208_v12  ;;  %v1214_v20 = vld [vmem:[#allocation7 + $0x34] ss:$8 sps:$4 sm:$0xff]   ;;  %v1200_v21 = vld [vmem:[#allocation5 + $0x60] ss:$8 sps:$4 sm:$0xff]   ;;  %v1216_v23 = vld [vmem:[#allocation7 + $0x30] ss:$8 sps:$4 sm:$0xff]  }
  0x52   :  { %v1201_v22 = vld [vmem:[#allocation5 + $0x74] ss:$8 sps:$4 sm:$0xff]   ;;  %v1217_v24 = vld [vmem:[#allocation7 + $0x44] ss:$8 sps:$4 sm:$0xff]   ;;  %v1203_v25 = vld [vmem:[#allocation5 + $0x70] ss:$8 sps:$4 sm:$0xff]  }
  0x53   :  { %v1219_v26 = vld [vmem:[#allocation7 + $0x40] ss:$8 sps:$4 sm:$0xff]   ;;  %v1220_v27 = vld [vmem:[#allocation7 + $0x54] ss:$8 sps:$4 sm:$0xff]   ;;  %v1222_v29 = vld [vmem:[#allocation7 + $0x50] ss:$8 sps:$4 sm:$0xff]  }
  0x54   :  { %204 = vmatpush1.bf16.msra.mxu0 %v1188_v6  ;;  %487 = vmatpush1.bf16.msra.mxu1 %v1210_v14  ;;  %v1223_v30 = vld [vmem:[#allocation7 + $0x64] ss:$8 sps:$4 sm:$0xff]   ;;  %v1225_v31 = vld [vmem:[#allocation7 + $0x60] ss:$8 sps:$4 sm:$0xff]   ;;  %v1226_v32 = vld [vmem:[#allocation7 + $0x74] ss:$8 sps:$4 sm:$0xff]  }
  0x55   :  { %205 = vmatprep.subr.bf16.mxu0 %v1189_v7  ;;  %488 = vmatprep.subr.bf16.mxu1 %v1211_v16  ;;  %v1228_v33 = vld [vmem:[#allocation7 + $0x70] ss:$8 sps:$4 sm:$0xff]   ;;  %v1229_v34 = vld [vmem:[#allocation7 + $0x84] ss:$8 sps:$4 sm:$0xff]   ;;  %v1231_v35 = vld [vmem:[#allocation7 + $0x80] ss:$8 sps:$4 sm:$0xff]  }
  0x56   :  { %v1232_v36 = vld [vmem:[#allocation7 + $0x94] ss:$8 sps:$4 sm:$0xff]   ;;  %v1234_v37 = vld [vmem:[#allocation7 + $0x90] ss:$8 sps:$4 sm:$0xff]   ;;  %v1235_v38 = vld [vmem:[#allocation7 + $0xa4] ss:$8 sps:$4 sm:$0xff]  }
  0x57   :  { %v1237_v39 = vld [vmem:[#allocation7 + $0xa0] ss:$8 sps:$4 sm:$0xff]   ;;  %v1238_v40 = vld [vmem:[#allocation7 + $0xb4] ss:$8 sps:$4 sm:$0xff]   ;;  %v1240_v41 = vld [vmem:[#allocation7 + $0xb0] ss:$8 sps:$4 sm:$0xff]  }
  0x58   :  { %206 = vmatpush1.bf16.msra.mxu0 %v1191_v8  ;;  %489 = vmatpush1.bf16.msra.mxu1 %v1213_v18  ;;  %v1241_v42 = vld [vmem:[#allocation7 + $0xc4] ss:$8 sps:$4 sm:$0xff]   ;;  %v1243_v43 = vld [vmem:[#allocation7 + $0xc0] ss:$8 sps:$4 sm:$0xff]   ;;  %v1244_v44 = vld [vmem:[#allocation7 + $0xd4] ss:$8 sps:$4 sm:$0xff]  }
  0x59   :  { %207 = vmatprep.subr.bf16.mxu0 %v1192_v9  ;;  %490 = vmatprep.subr.bf16.mxu1 %v1214_v20  ;;  %v1246_v45 = vld [vmem:[#allocation7 + $0xd0] ss:$8 sps:$4 sm:$0xff]   ;;  %v1247_v46 = vld [vmem:[#allocation7 + $0xe4] ss:$8 sps:$4 sm:$0xff]   ;;  %v1249_v47 = vld [vmem:[#allocation7 + $0xe0] ss:$8 sps:$4 sm:$0xff]  }
  0x5a   :  { %v1250_v48 = vld [vmem:[#allocation7 + $0xf4] ss:$8 sps:$4 sm:$0xff]   ;;  %v1252_v49 = vld [vmem:[#allocation7 + $0xf0] ss:$8 sps:$4 sm:$0xff]   ;;  %v1253_v50 = vld [vmem:[#allocation7 + $0x100] ss:$8 sps:$4 sm:$0xff]  }
  0x5b   :  { %v1255_v51 = vld [vmem:[#allocation7 + $0x104] ss:$8 sps:$4 sm:$0xff]   ;;  %v1258_v52 = vld [vmem:[#allocation7 + $0x114] ss:$8 sps:$4 sm:$0xff]   ;;  %v1256_v53 = vld [vmem:[#allocation7 + $0x110] ss:$8 sps:$4 sm:$0xff]  }
  0x5c   :  { %208 = vmatpush1.bf16.msra.mxu0 %v1194_v13  ;;  %491 = vmatpush1.bf16.msra.mxu1 %v1216_v23  ;;  %v1261_v54 = vld [vmem:[#allocation7 + $0x124] ss:$8 sps:$4 sm:$0xff]   ;;  %v1259_v55 = vld [vmem:[#allocation7 + $0x120] ss:$8 sps:$4 sm:$0xff]   ;;  %v1264_v56 = vld [vmem:[#allocation7 + $0x134] ss:$8 sps:$4 sm:$0xff]  }
  0x5d   :  { %209 = vmatprep.subr.bf16.mxu0 %v1195_v15  ;;  %492 = vmatprep.subr.bf16.mxu1 %v1217_v24  ;;  %v1262_v57 = vld [vmem:[#allocation7 + $0x130] ss:$8 sps:$4 sm:$0xff]   ;;  %v1267_v58 = vld [vmem:[#allocation7 + $0x144] ss:$8 sps:$4 sm:$0xff]   ;;  %v1265_v59 = vld [vmem:[#allocation7 + $0x140] ss:$8 sps:$4 sm:$0xff]  }
  0x5e   :  { %v1270_v60 = vld [vmem:[#allocation7 + $0x154] ss:$8 sps:$4 sm:$0xff]   ;;  %v1268_v61 = vld [vmem:[#allocation7 + $0x150] ss:$8 sps:$4 sm:$0xff]   ;;  %v1273_v62 = vld [vmem:[#allocation7 + $0x164] ss:$8 sps:$4 sm:$0xff]  }
  0x5f   :  { %v1271_v63 = vld [vmem:[#allocation7 + $0x160] ss:$8 sps:$4 sm:$0xff]   ;;  %v1276_v0 = vld [vmem:[#allocation7 + $0x174] ss:$8 sps:$4 sm:$0xff]   ;;  %v1274_v1 = vld [vmem:[#allocation7 + $0x170] ss:$8 sps:$4 sm:$0xff]  }
  0x60   :  { %210 = vmatpush1.bf16.msra.mxu0 %v1197_v17  ;;  %493 = vmatpush1.bf16.msra.mxu1 %v1219_v26  ;;  %v104_v3 = vshrl.u32 %v103_v2, 7  ;;  %v101_v5 = vld [vmem:[%s1615_s2] sm:$0x3]  ;;  %s1468_s10 = smov [#allocation10]  }
  0x61   :  { %211 = vmatprep.subr.bf16.mxu0 %v1198_v19  ;;  %494 = vmatprep.subr.bf16.mxu1 %v1220_v27  ;;  %v1292_v2 = vld [vmem:[#allocation7 + $0x1d0] ss:$8 sps:$4 sm:$0xff]   ;;  %s1035_s13 = sshll.u32 %s1468_s10, 4  ;;  %s1036_s13 = int_to_ptr.vmem [resolvable:$true] %s1035_s13 }
  0x62   :  { %v1576_v4 = vsub.s32 0, %v104_v3  ;;  %v1581_v6 = vsub.s32 1, %v104_v3  ;;  %v1297_v3 = vld [vmem:[#allocation7 + $0x1e4] ss:$8 sps:$4 sm:$0xff]   ;;  %s1429_s14 = scalar_lea.vmem %s1036_s13, 256  ;;  %p1434_p5 = scmp.lt.s32.totalorder %s1036_s13, %s1036_s13 }
  0x63   :  { %p1430_p4 = scmp.ne.s32.totalorder %s1036_s13, %s1429_s14  ;;  %p1435_p6 = scmp.lt.s32.totalorder %s1429_s14, %s1429_s14 }
  0x64   :  { %212 = vmatpush1.bf16.msra.mxu0 %v1200_v21  ;;  %495 = vmatpush1.bf16.msra.mxu1 %v1222_v29  ;;  %v106_v7 = vrot.slane %v101_v5, %v1576_v4  ;;  %v110_v8 = vrot.slane %v101_v5, %v1581_v6  ;;  %v1295_v5 = vld [vmem:[#allocation7 + $0x1e0] ss:$8 sps:$4 sm:$0xff]  }
  0x65   :  { %213 = vmatprep.subr.bf16.mxu0 %v1201_v22  ;;  %496 = vmatprep.subr.bf16.mxu1 %v1223_v30  ;;  %p1436_p7 = por %p1435_p6, %p1434_p5 }
  0x67   :  { %p1437_p8 = pnand %p1436_p7, %p1430_p4 }
  0x68   :  { %214 = vmatpush1.bf16.msra.mxu0 %v1203_v25  ;;  %497 = vmatpush1.bf16.msra.mxu1 %v1225_v31 }
  0x69   :  { %498 = vmatprep.subr.bf16.mxu1 %v1226_v32  ;;  %771 = vmatprep.subr.bf16.mxu0 %v1255_v51 }
  0x6b   :  { %232 = vmatmul.mubr.bf16.vlgmr.msra.gmra.mrb[0].mxu0 %v1204_v28 }
  0x6c   :  { %499 = vmatpush1.bf16.msra.mxu1 %v1228_v33  ;;  %772 = vmatpush1.bf16.msra.mxu0 %v1253_v50 }
  0x6d   :  { %500 = vmatprep.subr.bf16.mxu1 %v1229_v34  ;;  %773 = vmatprep.subr.bf16.mxu0 %v1258_v52 }
  0x70   :  { %501 = vmatpush1.bf16.msra.mxu1 %v1231_v35  ;;  %774 = vmatpush1.bf16.msra.mxu0 %v1256_v53 }
  0x71   :  { %502 = vmatprep.subr.bf16.mxu1 %v1232_v36  ;;  %775 = vmatprep.subr.bf16.mxu0 %v1261_v54 }
  0x74   :  { %503 = vmatpush1.bf16.msra.mxu1 %v1234_v37  ;;  %776 = vmatpush1.bf16.msra.mxu0 %v1259_v55  ;;  %v1279_v55 = vld [vmem:[#allocation7 + $0x184] ss:$8 sps:$4 sm:$0xff]  }
  0x75   :  { %504 = vmatprep.subr.bf16.mxu1 %v1235_v38  ;;  %777 = vmatprep.subr.bf16.mxu0 %v1264_v56  ;;  %v1277_v56 = vld [vmem:[#allocation7 + $0x180] ss:$8 sps:$4 sm:$0xff]  }
  0x78   :  { %505 = vmatpush1.bf16.msra.mxu1 %v1237_v39  ;;  %778 = vmatpush1.bf16.msra.mxu0 %v1262_v57  ;;  %v1282_v57 = vld [vmem:[#allocation7 + $0x194] ss:$8 sps:$4 sm:$0xff]  }
  0x79   :  { %506 = vmatprep.subr.bf16.mxu1 %v1238_v40  ;;  %779 = vmatprep.subr.bf16.mxu0 %v1267_v58  ;;  %v1280_v58 = vld [vmem:[#allocation7 + $0x190] ss:$8 sps:$4 sm:$0xff]  }
  0x7c   :  { %507 = vmatpush1.bf16.msra.mxu1 %v1240_v41  ;;  %780 = vmatpush1.bf16.msra.mxu0 %v1265_v59  ;;  %v1285_v59 = vld [vmem:[#allocation7 + $0x1a4] ss:$8 sps:$4 sm:$0xff]  }
  0x7d   :  { %508 = vmatprep.subr.bf16.mxu1 %v1241_v42  ;;  %781 = vmatprep.subr.bf16.mxu0 %v1270_v60  ;;  %v1283_v60 = vld [vmem:[#allocation7 + $0x1a0] ss:$8 sps:$4 sm:$0xff]  }
  0x80   :  { %509 = vmatpush1.bf16.msra.mxu1 %v1243_v43  ;;  %782 = vmatpush1.bf16.msra.mxu0 %v1268_v61  ;;  %v1288_v61 = vld [vmem:[#allocation7 + $0x1b4] ss:$8 sps:$4 sm:$0xff]  }
  0x81   :  { %510 = vmatprep.subr.bf16.mxu1 %v1244_v44  ;;  %783 = vmatprep.subr.bf16.mxu0 %v1273_v62  ;;  %v1286_v62 = vld [vmem:[#allocation7 + $0x1b0] ss:$8 sps:$4 sm:$0xff]  }
  0x84   :  { %511 = vmatpush1.bf16.msra.mxu1 %v1246_v45  ;;  %784 = vmatpush1.bf16.msra.mxu0 %v1271_v63  ;;  %v1289_v63 = vld [vmem:[#allocation7 + $0x1c0] ss:$8 sps:$4 sm:$0xff]  }
  0x85   :  { %512 = vmatprep.subr.bf16.mxu1 %v1247_v46  ;;  %785 = vmatprep.subr.bf16.mxu0 %v1276_v0  ;;  %v1291_v0 = vld [vmem:[#allocation7 + $0x1c4] ss:$8 sps:$4 sm:$0xff]  }
  0x88   :  { %513 = vmatpush1.bf16.msra.mxu1 %v1249_v47  ;;  %786 = vmatpush1.bf16.msra.mxu0 %v1274_v1  ;;  %v1294_v1 = vld [vmem:[#allocation7 + $0x1d4] ss:$8 sps:$4 sm:$0xff]  }
  0x89   :  { %514 = vmatprep.subr.bf16.mxu1 %v1250_v48  ;;  %787 = vmatprep.subr.bf16.mxu0 %v1279_v55 }
  0x8c   :  { %515 = vmatpush1.bf16.msra.mxu1 %v1252_v49  ;;  %788 = vmatpush1.bf16.msra.mxu0 %v1277_v56 }
  0x8d   :  { %789 = vmatprep.subr.bf16.mxu0 %v1282_v57 }
  0x90   :  { %790 = vmatpush1.bf16.msra.mxu0 %v1280_v58  ;;  %v1301_v58 = vld [vmem:[#allocation8 + $0x40] sm:$0xff]  }
  0x91   :  { %791 = vmatprep.subr.bf16.mxu0 %v1285_v59  ;;  %v1302_v59 = vld [vmem:[#allocation8] sm:$0xff]   ;;  %1148 = vmatprep.subr.bf16.mxu1 %v1301_v58 }
  0x94   :  { %792 = vmatpush1.bf16.msra.mxu0 %v1283_v60  ;;  %v1303_v60 = vld [vmem:[#allocation8 + $0x48] sm:$0xff]  }
  0x95   :  { %793 = vmatprep.subr.bf16.mxu0 %v1288_v61  ;;  %v1304_v61 = vld [vmem:[#allocation8 + $0x8] sm:$0xff]  }
  0x98   :  { %794 = vmatpush1.bf16.msra.mxu0 %v1286_v62  ;;  %v1305_v62 = vld [vmem:[#allocation8 + $0x50] sm:$0xff]  }
  0x99   :  { %795 = vmatprep.subr.bf16.mxu0 %v1291_v0  ;;  %v1307_v0 = vld [vmem:[#allocation8 + $0x58] sm:$0xff]  }
  0x9c   :  { %796 = vmatpush1.bf16.msra.mxu0 %v1289_v63  ;;  %v1306_v63 = vld [vmem:[#allocation8 + $0x10] sm:$0xff]  }
  0x9d   :  { %797 = vmatprep.subr.bf16.mxu0 %v1294_v1  ;;  %v1308_v1 = vld [vmem:[#allocation8 + $0x18] sm:$0xff]  }
  0xa0   :  { %798 = vmatpush1.bf16.msra.mxu0 %v1292_v2  ;;  %v1309_v2 = vld [vmem:[#allocation8 + $0x60] sm:$0xff]  }
  0xa1   :  { %799 = vmatprep.subr.bf16.mxu0 %v1297_v3  ;;  %v1310_v3 = vld [vmem:[#allocation8 + $0x20] sm:$0xff]  }
  0xa4   :  { %800 = vmatpush1.bf16.msra.mxu0 %v1295_v5  ;;  %v1311_v5 = vld [vmem:[#allocation8 + $0x68] sm:$0xff]  }
 0x13e   :  { %v233_v9 = vpop.f32.mrb[0].mxu0 }
 0x13f   :  { %v234_v10 = vadd.f32 %v233_v9, %v106_v7  ;;  %v235_v11 = vpop.f32.mrb[1].mxu0  ;;  %v312_v9 = vld [vmem:[%s1617_s4] sm:$0x3] }
 0x140   :  { %v236_v12 = vadd.f32 %v235_v11, %v110_v8  ;;  %v237_v13 = vpop.f32.mrb[2].mxu0  ;;  %v321_v11 = vrot.slane %v312_v9, %v1581_v6 }
 0x141   :  { %v246_v14 = vmul.f32 0.044715, %v234_v10  ;;  %v238_v15 = vadd.f32 %v237_v13, %v106_v7  ;;  %v239_v16 = vpop.f32.mrb[3].mxu0  ;;  %v242_v43 = vmul.f32 0.5, %v234_v10  ;;  %v1300_v7 = vld [vmem:[#allocation7 + $0x1f4] ss:$8 sps:$4 sm:$0xff]  }
 0x142   :  { %v247_v17 = vmul.f32 0.044715, %v236_v12  ;;  %v240_v18 = vadd.f32 %v239_v16, %v110_v8  ;;  %v243_v46 = vmul.f32 0.5, %v236_v12  ;;  %v1298_v8 = vld [vmem:[#allocation7 + $0x1f0] ss:$8 sps:$4 sm:$0xff]   ;;  %801 = vmatprep.subr.bf16.mxu0 %v1300_v7  ;;  %v1312_v7 = vld [vmem:[#allocation8 + $0x28] sm:$0xff]  }
 0x143   :  { %v250_v19 = vmul.f32 %v246_v14, %v234_v10  ;;  %v248_v20 = vmul.f32 0.044715, %v238_v15  ;;  %v244_v44 = vmul.f32 0.5, %v238_v15  ;;  %802 = vmatpush1.bf16.msra.mxu0 %v1298_v8  ;;  %v1313_v8 = vld [vmem:[#allocation8 + $0x70] sm:$0xff]  }
 0x144   :  { %v249_v21 = vmul.f32 0.044715, %v240_v18  ;;  %v251_v22 = vmul.f32 %v247_v17, %v236_v12  ;;  %v245_v47 = vmul.f32 0.5, %v240_v18 }
 0x145   :  { %v254_v23 = vmul.f32 %v250_v19, %v234_v10  ;;  %v252_v24 = vmul.f32 %v248_v20, %v238_v15 }
 0x146   :  { %v253_v25 = vmul.f32 %v249_v21, %v240_v18  ;;  %v255_v26 = vmul.f32 %v251_v22, %v236_v12 }
 0x147   :  { %v256_v27 = vmul.f32 %v252_v24, %v238_v15  ;;  %v258_v28 = vadd.f32 %v254_v23, %v234_v10  ;;  %v317_v10 = vrot.slane %v312_v9, %v1576_v4  ;;  %v1314_v9 = vld [vmem:[#allocation8 + $0x30] sm:$0xff]  }
 0x148   :  { %v257_v29 = vmul.f32 %v253_v25, %v240_v18  ;;  %v259_v30 = vadd.f32 %v255_v26, %v236_v12 }
 0x149   :  { %v260_v31 = vadd.f32 %v256_v27, %v238_v15  ;;  %v262_v32 = vmul.f32 0.7978846, %v258_v28 }
 0x14a   :  { %v261_v33 = vadd.f32 %v257_v29, %v240_v18  ;;  %v263_v34 = vmul.f32 0.7978846, %v259_v30 }
 0x14b   :  { %v264_v35 = vmul.f32 0.7978846, %v260_v31  ;;  %1317 = vtanh.f32 %v262_v32 }
 0x14c   :  { %v265_v36 = vmul.f32 0.7978846, %v261_v33  ;;  %1319 = vtanh.f32 %v263_v34 }
 0x14d   :  { %1321 = vtanh.f32 %v264_v35 }
 0x14e   :  { %1323 = vtanh.f32 %v265_v36 }
 0x155   :  { %v1318_v37 = vpop.eup %1317 }
 0x156   :  { %v1320_v38 = vpop.eup %1319  ;;  %v270_v39 = vadd.f32 1.0, %v1318_v37 }
 0x157   :  { %v1322_v40 = vpop.eup %1321  ;;  %v271_v41 = vadd.f32 1.0, %v1320_v38 }
 0x158   :  { %v1324_v42 = vpop.eup %1323  ;;  %v272_v45 = vadd.f32 1.0, %v1322_v40  ;;  %v274_v49 = vmul.f32 %v270_v39, %v242_v43 }
 0x159   :  { %v273_v48 = vadd.f32 1.0, %v1324_v42  ;;  %v275_v51 = vmul.f32 %v271_v41, %v243_v46 }
 0x15a   :  { %v276_v50 = vmul.f32 %v272_v45, %v244_v44 }
 0x15b   :  { %v277_v52 = vmul.f32 %v273_v48, %v245_v47 }
 0x15c   :  { %v278_v53 = vpack.c.bf16 %v276_v50, %v274_v49 }
 0x15d   :  { %v279_v54 = vpack.c.bf16 %v277_v52, %v275_v51 }
 0x15f   :  { %516 = vmatprep.mubr.bf16.mxu1 %v279_v54 }
 0x160   :  { %517 = vmatmul.mubr.bf16.vlgmr.msra.gmra.mrb[0].mxu1 %v278_v53 }
 0x161   :  { %1149 = vmatpush3.bf16.msra.mxu1 %v1302_v59 }
 0x162   :  { %1150 = vmatprep.subr.bf16.mxu1 %v1303_v60  ;;  %v1131_v60 = vld [vmem:[%s1619_s6] ss:$0 sm:$0xff] }
 0x165   :  { %1151 = vmatpush3.bf16.msra.mxu1 %v1304_v61 }
 0x166   :  { %1152 = vmatprep.subr.bf16.mxu1 %v1305_v62 }
 0x169   :  { %1153 = vmatpush3.bf16.msra.mxu1 %v1306_v63 }
 0x16a   :  { %1154 = vmatprep.subr.bf16.mxu1 %v1307_v0 }
 0x16d   :  { %1155 = vmatpush3.bf16.msra.mxu1 %v1308_v1 }
 0x16e   :  { %1156 = vmatprep.subr.bf16.mxu1 %v1309_v2 }
 0x171   :  { %1157 = vmatpush3.bf16.msra.mxu1 %v1310_v3 }
 0x172   :  { %1158 = vmatprep.subr.bf16.mxu1 %v1311_v5 }
 0x175   :  { %1159 = vmatpush3.bf16.msra.mxu1 %v1312_v7 }
 0x176   :  { %1160 = vmatprep.subr.bf16.mxu1 %v1313_v8 }
 0x179   :  { %1161 = vmatpush3.bf16.msra.mxu1 %v1314_v9 }
 0x233   :  { %v518_v12 = vpop.f32.mrb[0].mxu1 }
 0x234   :  { %v519_v13 = vadd.f32 %v518_v12, %v317_v10  ;;  %v520_v14 = vpop.f32.mrb[1].mxu1  ;;  %v1098_v12 = vld [vmem:[%s1617_s4 + $0x2] sm:$0x3] }
 0x235   :  { %v521_v15 = vadd.f32 %v520_v14, %v321_v11  ;;  %v522_v16 = vpop.f32.mrb[2].mxu1  ;;  %v608_v14 = vrot.slane %v1098_v12, %v1581_v6 }
 0x236   :  { %v531_v17 = vmul.f32 0.044715, %v519_v13  ;;  %v523_v18 = vadd.f32 %v522_v16, %v317_v10  ;;  %v524_v19 = vpop.f32.mrb[3].mxu1  ;;  %v527_v46 = vmul.f32 0.5, %v519_v13  ;;  %v1315_v10 = vld [vmem:[#allocation8 + $0x78] sm:$0xff]  }
 0x237   :  { %v532_v20 = vmul.f32 0.044715, %v521_v15  ;;  %v525_v21 = vadd.f32 %v524_v19, %v321_v11  ;;  %v528_v49 = vmul.f32 0.5, %v521_v15  ;;  %v1316_v11 = vld [vmem:[#allocation8 + $0x38] sm:$0xff]   ;;  %1162 = vmatprep.subr.bf16.mxu1 %v1315_v10 }
 0x238   :  { %v535_v22 = vmul.f32 %v531_v17, %v519_v13  ;;  %v533_v23 = vmul.f32 0.044715, %v523_v18  ;;  %v529_v47 = vmul.f32 0.5, %v523_v18  ;;  %1163 = vmatpush3.bf16.msra.mxu1 %v1316_v11 }
 0x239   :  { %v536_v24 = vmul.f32 %v532_v20, %v521_v15  ;;  %v534_v25 = vmul.f32 0.044715, %v525_v21  ;;  %v530_v50 = vmul.f32 0.5, %v525_v21 }
 0x23a   :  { %v539_v26 = vmul.f32 %v535_v22, %v519_v13  ;;  %v537_v27 = vmul.f32 %v533_v23, %v523_v18 }
 0x23b   :  { %v540_v28 = vmul.f32 %v536_v24, %v521_v15  ;;  %v538_v29 = vmul.f32 %v534_v25, %v525_v21 }
 0x23c   :  { %v543_v30 = vadd.f32 %v539_v26, %v519_v13  ;;  %v541_v31 = vmul.f32 %v537_v27, %v523_v18  ;;  %v604_v13 = vrot.slane %v1098_v12, %v1576_v4 }
 0x23d   :  { %v542_v32 = vmul.f32 %v538_v29, %v525_v21  ;;  %v544_v33 = vadd.f32 %v540_v28, %v521_v15 }
 0x23e   :  { %v547_v34 = vmul.f32 0.7978846, %v543_v30  ;;  %v545_v35 = vadd.f32 %v541_v31, %v523_v18 }
 0x23f   :  { %v546_v36 = vadd.f32 %v542_v32, %v525_v21  ;;  %v548_v37 = vmul.f32 0.7978846, %v544_v33 }
 0x240   :  { %1325 = vtanh.f32 %v547_v34  ;;  %v549_v38 = vmul.f32 0.7978846, %v545_v35 }
 0x241   :  { %v550_v39 = vmul.f32 0.7978846, %v546_v36  ;;  %1327 = vtanh.f32 %v548_v37 }
 0x242   :  { %1329 = vtanh.f32 %v549_v38 }
 0x243   :  { %1331 = vtanh.f32 %v550_v39 }
 0x24a   :  { %v1326_v40 = vpop.eup %1325 }
 0x24b   :  { %v1328_v41 = vpop.eup %1327  ;;  %v555_v42 = vadd.f32 1.0, %v1326_v40 }
 0x24c   :  { %v1330_v43 = vpop.eup %1329  ;;  %v556_v44 = vadd.f32 1.0, %v1328_v41 }
 0x24d   :  { %v1332_v45 = vpop.eup %1331  ;;  %v557_v48 = vadd.f32 1.0, %v1330_v43  ;;  %v559_v52 = vmul.f32 %v555_v42, %v527_v46 }
 0x24e   :  { %v558_v51 = vadd.f32 1.0, %v1332_v45  ;;  %v560_v54 = vmul.f32 %v556_v44, %v528_v49 }
 0x24f   :  { %v561_v53 = vmul.f32 %v557_v48, %v529_v47 }
 0x250   :  { %v562_v55 = vmul.f32 %v558_v51, %v530_v50 }
 0x251   :  { %v563_v56 = vpack.c.bf16 %v561_v53, %v559_v52 }
 0x252   :  { %v564_v57 = vpack.c.bf16 %v562_v55, %v560_v54 }
 0x254   :  { %803 = vmatprep.mubr.bf16.mxu0 %v564_v57 }
 0x255   :  { %804 = vmatmul.mubr.bf16.vlgmr.msra.gmra.mrb[4].mxu0 %v563_v56 }
 0x328   :  { %v805_v15 = vpop.f32.mrb[4].mxu0 }
 0x329   :  { %v806_v16 = vadd.f32 %v805_v15, %v604_v13  ;;  %v807_v17 = vpop.f32.mrb[5].mxu0 }
 0x32a   :  { %v808_v18 = vadd.f32 %v807_v17, %v608_v14  ;;  %v809_v19 = vpop.f32.mrb[6].mxu0 }
 0x32b   :  { %v818_v20 = vmul.f32 0.044715, %v806_v16  ;;  %v810_v21 = vadd.f32 %v809_v19, %v604_v13  ;;  %v811_v22 = vpop.f32.mrb[7].mxu0  ;;  %v814_v47 = vmul.f32 0.5, %v806_v16 }
 0x32c   :  { %v819_v23 = vmul.f32 0.044715, %v808_v18  ;;  %v812_v24 = vadd.f32 %v811_v22, %v608_v14  ;;  %v815_v50 = vmul.f32 0.5, %v808_v18 }
 0x32d   :  { %v822_v25 = vmul.f32 %v818_v20, %v806_v16  ;;  %v820_v26 = vmul.f32 0.044715, %v810_v21  ;;  %v816_v48 = vmul.f32 0.5, %v810_v21 }
 0x32e   :  { %v823_v27 = vmul.f32 %v819_v23, %v808_v18  ;;  %v821_v28 = vmul.f32 0.044715, %v812_v24  ;;  %v817_v51 = vmul.f32 0.5, %v812_v24 }
 0x32f   :  { %v826_v29 = vmul.f32 %v822_v25, %v806_v16  ;;  %v824_v30 = vmul.f32 %v820_v26, %v810_v21 }
 0x330   :  { %v827_v31 = vmul.f32 %v823_v27, %v808_v18  ;;  %v825_v4 = vmul.f32 %v821_v28, %v812_v24 }
 0x331   :  { %v830_v32 = vadd.f32 %v826_v29, %v806_v16  ;;  %v828_v6 = vmul.f32 %v824_v30, %v810_v21 }
 0x332   :  { %v829_v33 = vmul.f32 %v825_v4, %v812_v24  ;;  %v831_v34 = vadd.f32 %v827_v31, %v808_v18 }
 0x333   :  { %v834_v35 = vmul.f32 0.7978846, %v830_v32  ;;  %v832_v36 = vadd.f32 %v828_v6, %v810_v21 }
 0x334   :  { %v833_v37 = vadd.f32 %v829_v33, %v812_v24  ;;  %v835_v38 = vmul.f32 0.7978846, %v831_v34 }
 0x335   :  { %1333 = vtanh.f32 %v834_v35  ;;  %v836_v39 = vmul.f32 0.7978846, %v832_v36 }
 0x336   :  { %v837_v40 = vmul.f32 0.7978846, %v833_v37  ;;  %1335 = vtanh.f32 %v835_v38 }
 0x337   :  { %1337 = vtanh.f32 %v836_v39 }
 0x338   :  { %1339 = vtanh.f32 %v837_v40 }
 0x33f   :  { %v1334_v41 = vpop.eup %1333 }
 0x340   :  { %v1336_v42 = vpop.eup %1335  ;;  %v842_v43 = vadd.f32 1.0, %v1334_v41 }
 0x341   :  { %v1338_v44 = vpop.eup %1337  ;;  %v843_v45 = vadd.f32 1.0, %v1336_v42 }
 0x342   :  { %v1340_v46 = vpop.eup %1339  ;;  %v844_v49 = vadd.f32 1.0, %v1338_v44  ;;  %v846_v53 = vmul.f32 %v842_v43, %v814_v47 }
 0x343   :  { %v845_v52 = vadd.f32 1.0, %v1340_v46  ;;  %v847_v55 = vmul.f32 %v843_v45, %v815_v50 }
 0x344   :  { %v848_v54 = vmul.f32 %v844_v49, %v816_v48 }
 0x345   :  { %v849_v56 = vmul.f32 %v845_v52, %v817_v51 }
 0x346   :  { %v850_v57 = vpack.c.bf16 %v848_v54, %v846_v53 }
 0x347   :  { %v851_v58 = vpack.c.bf16 %v849_v56, %v847_v55 }
 0x349   :  { %1019 = vmatprep.mubr.bf16.mxu1 %v851_v58 }
 0x34a   :  { %1020 = vmatmul.mubr.bf16.vlgmr.msra.gmra.mrb[4].mxu1 %v850_v57 }
 0x41d   :  { %v1164_v59 = vpop.f32.mrb[4].mxu1 }
 0x41e   :  { %v1165_v61 = vpop.f32.mrb[5].mxu1 }
 0x41f   :  { %v1166_v62 = vadd.f32 %v1165_v61, %v1164_v59  ;;  %v1167_v63 = vpop.f32.mrb[6].mxu1 }
 0x420   :  { %v1168_v0 = vpop.f32.mrb[7].mxu1 }
 0x421   :  { %v1022_v1 = vadd.f32 %v1166_v62, %v1131_v60  ;;  %v1169_v2 = vadd.f32 %v1168_v0, %v1167_v63 }
 0x423   :  { %1028 = vst [vmem:[#allocation10] sm:$0xff] %v1022_v1  ;;  %v1025_v3 = vadd.f32 %v1169_v2, %v1131_v60 }
 0x425   :  { %1029 = vst [vmem:[#allocation10 + $0x8] sm:$0xff] %v1025_v3 }
 0x426   :  { %1440 = shalt.err (!%p1437_p8)
}
 0x427   :  { %s1441_s17 = scalar_lea.hbm %s1620_s7, 256 }
 0x428   :  { %p1442_p9 = scmp.ne.s32.totalorder %s1620_s7, %s1441_s17  ;;  %p1445_p10 = scmp.lt.u32.totalorder %s1441_s17, %s1620_s7 }
 0x42a   :  { %p1447_p11 = pnand %p1445_p10, %p1442_p9 }
 0x42c   :  { %1450 = shalt.err (!%p1447_p11)
}
 0x42d   :  { %1041 = dma.vmem_to_hbm [thread:$0]  %s1036_s13, 256, %s1620_s7, [#allocation4], %s1460_s11, %s1460_s11, %s1461_s12  }
 0x42e   :  { %1457 = dma.done.wait [#allocation4], 256  }
 0x42f   :  { %1458 = vsyncadd [#allocation4], 4294967040 }
 0x430   :  { %1045 = vsyncpa [#allocation3], 1 }
 0x431   :  { %1046 = vsyncpa [#allocation6], 1 }
 0x432   :  { %1047 = vsyncpa [#allocation9], 1 }
 0x433   :  { %1048 = vsyncpa [#allocation4], 1 }

</bundles_post_ra>
